<compile_context>
chip_gen: v7x
topology: tpu7x:2x2x1
jax: 0.10.0
libtpu: 0.0.40
codegen_flags: <defaults>
</compile_context>

<pallas_src>
import functools

import jax
import jax.numpy as jnp
from jax.experimental import pallas as pl
from jax.experimental.pallas import tpu as pltpu


# --------------------------------------------------------------------------- #
# Kernel
# --------------------------------------------------------------------------- #
def ae_kernel(x_ref, eps_ref,
              w1_ref, b1_ref,
              wm_ref, bm_ref, wv_ref, bv_ref,
              w6_ref, b6_ref, wd_ref, bd_ref,
              out_ref):
    x = x_ref[...]

    # Encoder front: h1 = tanh(x @ W1 + b1)
    h1 = jnp.tanh(jnp.dot(x, w1_ref[...],
                          preferred_element_type=jnp.float32) + b1_ref[...])

    # Folded fc2..fc51 / fc2..fc52 (two independent MXU ops, no serial chain)
    mean = jnp.dot(h1, wm_ref[...],
                   preferred_element_type=jnp.float32) + bm_ref[...]
    logvar = jnp.dot(h1, wv_ref[...],
                     preferred_element_type=jnp.float32) + bv_ref[...]

    # Reparameterization: z = mean + eps * exp(0.5 * logvar)   (exp -> EUP)
    z = mean + eps_ref[...] * jnp.exp(0.5 * logvar)

    # Decoder front: h5 = tanh(z @ W6 + b6)
    h5 = jnp.tanh(jnp.dot(z, w6_ref[...],
                          preferred_element_type=jnp.float32) + b6_ref[...])

    # Folded fc7..fc10
    recon = jnp.dot(h5, wd_ref[...],
                    preferred_element_type=jnp.float32) + bd_ref[...]
    out_ref[...] = recon.astype(out_ref.dtype)


# --------------------------------------------------------------------------- #
# Trace-time folding of the linear-only chains
# --------------------------------------------------------------------------- #
def fold_params(p):
    # Encoder: h4 = h1 @ A + a  with A = W2 W3 W4
    A = p["w2"] @ p["w3"] @ p["w4"]                                  # (32, 4)
    a = p["b2"] @ p["w3"] @ p["w4"] + p["b3"] @ p["w4"] + p["b4"]    # (1, 4)
    w_mean = A @ p["w51"]
    b_mean = a @ p["w51"] + p["b51"]
    w_logvar = A @ p["w52"]
    b_logvar = a @ p["w52"] + p["b52"]
    # Decoder: recon = h5 @ W_dec + b_dec  with W_dec = W7 W8 W9 W10
    w_dec = p["w7"] @ p["w8"] @ p["w9"] @ p["w10"]                   # (4, out)
    b_dec = (p["b7"] @ p["w8"] @ p["w9"] @ p["w10"]
             + p["b8"] @ p["w9"] @ p["w10"]
             + p["b9"] @ p["w10"]
             + p["b10"])                                             # (1, out)
    return {"w1": p["w1"], "b1": p["b1"],
            "w_mean": w_mean, "b_mean": b_mean,
            "w_logvar": w_logvar, "b_logvar": b_logvar,
            "w6": p["w6"], "b6": p["b6"],
            "w_dec": w_dec, "b_dec": b_dec}


# --------------------------------------------------------------------------- #
# Wrapper
# --------------------------------------------------------------------------- #
@functools.partial(jax.jit, static_argnames=("block_rows",))
def ae_forward(x, eps, params, *, block_rows=512):
    """Full AE forward (encode -> reparameterize -> decode) in one Pallas call.

    x:   (N, input_dim) float32  (already flattened, as in x.view(-1, input_dim))
    eps: (N, latent_dim) float32 (stands in for torch.randn_like(std))
    """
    N, input_dim = x.shape
    latent_dim = eps.shape[1]
    f = fold_params(params)
    out_dim = f["w_dec"].shape[1]

    # Block size: multiple of 8 sublanes, no larger than the (padded) batch.
    # Default 512 rows keeps per-grid-step overhead amortized; per-block VMEM
    # stays tiny even within v7x's 64 MiB VMEM / 32 MiB scoped default.
    block_rows = max(8, min(block_rows, (N + 7) // 8 * 8))
    block_rows = (block_rows + 7) // 8 * 8
    n_blocks = pl.cdiv(N, block_rows)
    n_pad = n_blocks * block_rows
    if n_pad != N:
        x = jnp.pad(x, ((0, n_pad - N), (0, 0)))
        eps = jnp.pad(eps, ((0, n_pad - N), (0, 0)))

    def row_spec(ncols):
        return pl.BlockSpec((block_rows, ncols), lambda i: (i, 0))

    def full_spec(arr):
        # Constant index map -> fetched once, resident across the grid.
        return pl.BlockSpec(arr.shape, lambda i: (0, 0))

    param_order = ["w1", "b1", "w_mean", "b_mean", "w_logvar", "b_logvar",
                   "w6", "b6", "w_dec", "b_dec"]
    param_args = [f[k] for k in param_order]

    out_padded = pl.pallas_call(
        ae_kernel,
        out_shape=jax.ShapeDtypeStruct((n_pad, out_dim), jnp.float32),
        grid_spec=pltpu.PrefetchScalarGridSpec(
            num_scalar_prefetch=0,
            grid=(n_blocks,),
            in_specs=([row_spec(input_dim), row_spec(latent_dim)]
                      + [full_spec(p) for p in param_args]),
            out_specs=row_spec(out_dim),
        ),
        compiler_params=pltpu.CompilerParams(
            dimension_semantics=("parallel",)),
    )(x, eps, *param_args)

    return out_padded[:N] if n_pad != N else out_padded


# --------------------------------------------------------------------------- #
# Parameters + pure-JAX reference (unfolded, mirrors the PyTorch forward)
# --------------------------------------------------------------------------- #
def init_params(key, input_dim, latent_dim):
    """Deterministic synthetic nn.Linear-style params, stored (in, out)/(1, out)."""
    dims = {
        "1": (input_dim, 32), "2": (32, 16), "3": (16, 8), "4": (8, 4),
        "51": (4, latent_dim), "52": (4, latent_dim),
        "6": (latent_dim, 4), "7": (4, 8), "8": (8, 16), "9": (16, 32),
        "10": (32, input_dim),
    }
    params = {}
    for name, (d_in, d_out) in dims.items():
        key, kw, kb = jax.random.split(key, 3)
        bound = 1.0 / jnp.sqrt(d_in)  # nn.Linear default init range
        params[f"w{name}"] = jax.random.uniform(
            kw, (d_in, d_out), jnp.float32, -bound, bound)
        params[f"b{name}"] = jax.random.uniform(
            kb, (1, d_out), jnp.float32, -bound, bound)
    return params


def reference_forward(x, eps, p):
    h1 = jnp.tanh(x @ p["w1"] + p["b1"])
    h2 = h1 @ p["w2"] + p["b2"]
    h3 = h2 @ p["w3"] + p["b3"]
    h4 = h3 @ p["w4"] + p["b4"]
    mean = h4 @ p["w51"] + p["b51"]
    logvar = h4 @ p["w52"] + p["b52"]
    z = mean + eps * jnp.exp(0.5 * logvar)
    h5 = jnp.tanh(z @ p["w6"] + p["b6"])
    h6 = h5 @ p["w7"] + p["b7"]
    h7 = h6 @ p["w8"] + p["b8"]
    h8 = h7 @ p["w9"] + p["b9"]
    return h8 @ p["w10"] + p["b10"]


# --------------------------------------------------------------------------- #
# Demo / self-check
# --------------------------------------------------------------------------- #
if __name__ == "__main__":
    key = jax.random.PRNGKey(0)
    input_dim, latent_dim = 16, 4

    k_x, k_eps, k_p = jax.random.split(key, 3)
    # AE flattens any input via x.view(-1, input_dim).
    x4d = jax.random.normal(k_x, (2, 4, 16, 16), jnp.float32)
    x = x4d.reshape(-1, input_dim)                       # (128, 16)
    # TODO(synk): eps is a host-supplied N(0,1) sample standing in for
    # torch.randn_like; it could be generated in-kernel with pltpu.prng_* but
    # would not be bit-exact with the torch RNG.
    eps = jax.random.normal(k_eps, (x.shape[0], latent_dim), jnp.float32)
    params = init_params(k_p, input_dim, latent_dim)

    # Tiny demo batch: use block_rows=64 so the grid has 2 parallel steps
    # (keeps both v7x TensorCores busy). Production default is block_rows=512.
    out = ae_forward(x, eps, params, block_rows=64)
    jax.block_until_ready(out)

    ref = reference_forward(x, eps, params)
    assert out.shape == (x.shape[0], input_dim)
    # Folded weights change f32 accumulation order -> slightly loosened tol.
    assert jnp.allclose(out, ref, atol=1e-4, rtol=1e-4)

    # Exercise the cdiv + zero-padding path (N=128 not divisible by 80).
    out2 = ae_forward(x, eps, params, block_rows=80)
    jax.block_until_ready(out2)
    assert out2.shape == (x.shape[0], input_dim)
    assert jnp.allclose(out2, ref, atol=1e-4, rtol=1e-4)

    print("KERNEL_OK")
</pallas_src>

<mosaic_0001>
module attributes {stable_mosaic.version = 11 : i64} {
  func.func @ae_kernel(%arg0: i32, %arg1: memref<64x16xf32, #tpu.memory_space<vmem>>, %arg2: memref<64x4xf32, #tpu.memory_space<vmem>>, %arg3: memref<16x32xf32, #tpu.memory_space<vmem>>, %arg4: memref<1x32xf32, #tpu.memory_space<vmem>>, %arg5: memref<32x4xf32, #tpu.memory_space<vmem>>, %arg6: memref<1x4xf32, #tpu.memory_space<vmem>>, %arg7: memref<32x4xf32, #tpu.memory_space<vmem>>, %arg8: memref<1x4xf32, #tpu.memory_space<vmem>>, %arg9: memref<4x4xf32, #tpu.memory_space<vmem>>, %arg10: memref<1x4xf32, #tpu.memory_space<vmem>>, %arg11: memref<4x16xf32, #tpu.memory_space<vmem>>, %arg12: memref<1x16xf32, #tpu.memory_space<vmem>>, %arg13: memref<64x16xf32, #tpu.memory_space<vmem>>) attributes {dimension_semantics = [#tpu.dimension_semantics<parallel>], iteration_bounds = array<i64: 2>, scalar_prefetch = 0 : i64, scratch_operands = 0 : i64, tpu.core_type = #tpu.core_type<tc>, window_params = [{transform_indices = @transform_0, window_bounds = array<i64: 64, 16>}, {transform_indices = @transform_1, window_bounds = array<i64: 64, 4>}, {pipeline_mode = #tpu.pipeline_mode<synchronous>, transform_indices = @transform_2, window_bounds = array<i64: 16, 32>}, {pipeline_mode = #tpu.pipeline_mode<synchronous>, transform_indices = @transform_3, window_bounds = array<i64: 1, 32>}, {pipeline_mode = #tpu.pipeline_mode<synchronous>, transform_indices = @transform_4, window_bounds = array<i64: 32, 4>}, {pipeline_mode = #tpu.pipeline_mode<synchronous>, transform_indices = @transform_5, window_bounds = array<i64: 1, 4>}, {pipeline_mode = #tpu.pipeline_mode<synchronous>, transform_indices = @transform_6, window_bounds = array<i64: 32, 4>}, {pipeline_mode = #tpu.pipeline_mode<synchronous>, transform_indices = @transform_7, window_bounds = array<i64: 1, 4>}, {pipeline_mode = #tpu.pipeline_mode<synchronous>, transform_indices = @transform_8, window_bounds = array<i64: 4, 4>}, {pipeline_mode = #tpu.pipeline_mode<synchronous>, transform_indices = @transform_9, window_bounds = array<i64: 1, 4>}, {pipeline_mode = #tpu.pipeline_mode<synchronous>, transform_indices = @transform_10, window_bounds = array<i64: 4, 16>}, {pipeline_mode = #tpu.pipeline_mode<synchronous>, transform_indices = @transform_11, window_bounds = array<i64: 1, 16>}, {transform_indices = @transform_12, window_bounds = array<i64: 64, 16>}]} {
    %c0 = arith.constant 0 : index
    %c0_0 = arith.constant 0 : index
    %0 = vector.load %arg1[%c0, %c0_0] : memref<64x16xf32, #tpu.memory_space<vmem>>, vector<64x16xf32>
    %c0_1 = arith.constant 0 : index
    %c0_2 = arith.constant 0 : index
    %1 = vector.load %arg3[%c0_1, %c0_2] : memref<16x32xf32, #tpu.memory_space<vmem>>, vector<16x32xf32>
    %cst = arith.constant dense<0.000000e+00> : vector<64x32xf32>
    %2 = tpu.matmul %0, %1, %cst {dimension_numbers = #tpu.dot_dimension_numbers<[1], [0], [0], [1], [0, 0, 1, 1], [], []>} : vector<64x16xf32>, vector<16x32xf32>, vector<64x32xf32> -> vector<64x32xf32>
    %c0_3 = arith.constant 0 : index
    %c0_4 = arith.constant 0 : index
    %3 = vector.load %arg4[%c0_3, %c0_4] : memref<1x32xf32, #tpu.memory_space<vmem>>, vector<1x32xf32>
    %4 = vector.broadcast %3 : vector<1x32xf32> to vector<64x32xf32>
    %5 = arith.addf %2, %4 : vector<64x32xf32>
    %6 = math.tanh %5 : vector<64x32xf32>
    %c0_5 = arith.constant 0 : index
    %c0_6 = arith.constant 0 : index
    %7 = vector.load %arg5[%c0_5, %c0_6] : memref<32x4xf32, #tpu.memory_space<vmem>>, vector<32x4xf32>
    %cst_7 = arith.constant dense<0.000000e+00> : vector<64x4xf32>
    %8 = tpu.matmul %6, %7, %cst_7 {dimension_numbers = #tpu.dot_dimension_numbers<[1], [0], [0], [1], [0, 0, 1, 1], [], []>} : vector<64x32xf32>, vector<32x4xf32>, vector<64x4xf32> -> vector<64x4xf32>
    %c0_8 = arith.constant 0 : index
    %c0_9 = arith.constant 0 : index
    %9 = vector.load %arg6[%c0_8, %c0_9] : memref<1x4xf32, #tpu.memory_space<vmem>>, vector<1x4xf32>
    %10 = vector.broadcast %9 : vector<1x4xf32> to vector<64x4xf32>
    %11 = arith.addf %8, %10 : vector<64x4xf32>
    %c0_10 = arith.constant 0 : index
    %c0_11 = arith.constant 0 : index
    %12 = vector.load %arg7[%c0_10, %c0_11] : memref<32x4xf32, #tpu.memory_space<vmem>>, vector<32x4xf32>
    %cst_12 = arith.constant dense<0.000000e+00> : vector<64x4xf32>
    %13 = tpu.matmul %6, %12, %cst_12 {dimension_numbers = #tpu.dot_dimension_numbers<[1], [0], [0], [1], [0, 0, 1, 1], [], []>} : vector<64x32xf32>, vector<32x4xf32>, vector<64x4xf32> -> vector<64x4xf32>
    %c0_13 = arith.constant 0 : index
    %c0_14 = arith.constant 0 : index
    %14 = vector.load %arg8[%c0_13, %c0_14] : memref<1x4xf32, #tpu.memory_space<vmem>>, vector<1x4xf32>
    %15 = vector.broadcast %14 : vector<1x4xf32> to vector<64x4xf32>
    %16 = arith.addf %13, %15 : vector<64x4xf32>
    %c0_15 = arith.constant 0 : index
    %c0_16 = arith.constant 0 : index
    %17 = vector.load %arg2[%c0_15, %c0_16] : memref<64x4xf32, #tpu.memory_space<vmem>>, vector<64x4xf32>
    %cst_17 = arith.constant 5.000000e-01 : f32
    %18 = vector.broadcast %cst_17 : f32 to vector<64x4xf32>
    %19 = arith.mulf %18, %16 : vector<64x4xf32>
    %20 = math.exp %19 : vector<64x4xf32>
    %21 = arith.mulf %17, %20 : vector<64x4xf32>
    %22 = arith.addf %11, %21 : vector<64x4xf32>
    %c0_18 = arith.constant 0 : index
    %c0_19 = arith.constant 0 : index
    %23 = vector.load %arg9[%c0_18, %c0_19] : memref<4x4xf32, #tpu.memory_space<vmem>>, vector<4x4xf32>
    %cst_20 = arith.constant dense<0.000000e+00> : vector<64x4xf32>
    %24 = tpu.matmul %22, %23, %cst_20 {dimension_numbers = #tpu.dot_dimension_numbers<[1], [0], [0], [1], [0, 0, 1, 1], [], []>} : vector<64x4xf32>, vector<4x4xf32>, vector<64x4xf32> -> vector<64x4xf32>
    %c0_21 = arith.constant 0 : index
    %c0_22 = arith.constant 0 : index
    %25 = vector.load %arg10[%c0_21, %c0_22] : memref<1x4xf32, #tpu.memory_space<vmem>>, vector<1x4xf32>
    %26 = vector.broadcast %25 : vector<1x4xf32> to vector<64x4xf32>
    %27 = arith.addf %24, %26 : vector<64x4xf32>
    %28 = math.tanh %27 : vector<64x4xf32>
    %c0_23 = arith.constant 0 : index
    %c0_24 = arith.constant 0 : index
    %29 = vector.load %arg11[%c0_23, %c0_24] : memref<4x16xf32, #tpu.memory_space<vmem>>, vector<4x16xf32>
    %cst_25 = arith.constant dense<0.000000e+00> : vector<64x16xf32>
    %30 = tpu.matmul %28, %29, %cst_25 {dimension_numbers = #tpu.dot_dimension_numbers<[1], [0], [0], [1], [0, 0, 1, 1], [], []>} : vector<64x4xf32>, vector<4x16xf32>, vector<64x16xf32> -> vector<64x16xf32>
    %c0_26 = arith.constant 0 : index
    %c0_27 = arith.constant 0 : index
    %31 = vector.load %arg12[%c0_26, %c0_27] : memref<1x16xf32, #tpu.memory_space<vmem>>, vector<1x16xf32>
    %32 = vector.broadcast %31 : vector<1x16xf32> to vector<64x16xf32>
    %33 = arith.addf %30, %32 : vector<64x16xf32>
    %c0_28 = arith.constant 0 : index
    %c0_29 = arith.constant 0 : index
    %34 = vector.load %arg13[%c0_28, %c0_29] : memref<64x16xf32, #tpu.memory_space<vmem>>, vector<64x16xf32>
    tpu.vector_store %arg13[%c0_28, %c0_29], %33 {strides = array<i32>} : memref<64x16xf32, #tpu.memory_space<vmem>>, vector<64x16xf32>,
    return
  }
  func.func @transform_0(%arg0: i32) -> (i32, i32) {
    %c0_i32 = arith.constant 0 : i32
    %c0_i32_0 = arith.constant 0 : i32
    return %arg0, %c0_i32 : i32, i32
  }
  func.func @transform_1(%arg0: i32) -> (i32, i32) {
    %c0_i32 = arith.constant 0 : i32
    %c0_i32_0 = arith.constant 0 : i32
    return %arg0, %c0_i32 : i32, i32
  }
  func.func @transform_2(%arg0: i32) -> (i32, i32) {
    %c0_i32 = arith.constant 0 : i32
    %c0_i32_0 = arith.constant 0 : i32
    %c0_i32_1 = arith.constant 0 : i32
    return %c0_i32, %c0_i32_0 : i32, i32
  }
  func.func @transform_3(%arg0: i32) -> (i32, i32) {
    %c0_i32 = arith.constant 0 : i32
    %c0_i32_0 = arith.constant 0 : i32
    %c0_i32_1 = arith.constant 0 : i32
    return %c0_i32, %c0_i32_0 : i32, i32
  }
  func.func @transform_4(%arg0: i32) -> (i32, i32) {
    %c0_i32 = arith.constant 0 : i32
    %c0_i32_0 = arith.constant 0 : i32
    %c0_i32_1 = arith.constant 0 : i32
    return %c0_i32, %c0_i32_0 : i32, i32
  }
  func.func @transform_5(%arg0: i32) -> (i32, i32) {
    %c0_i32 = arith.constant 0 : i32
    %c0_i32_0 = arith.constant 0 : i32
    %c0_i32_1 = arith.constant 0 : i32
    return %c0_i32, %c0_i32_0 : i32, i32
  }
  func.func @transform_6(%arg0: i32) -> (i32, i32) {
    %c0_i32 = arith.constant 0 : i32
    %c0_i32_0 = arith.constant 0 : i32
    %c0_i32_1 = arith.constant 0 : i32
    return %c0_i32, %c0_i32_0 : i32, i32
  }
  func.func @transform_7(%arg0: i32) -> (i32, i32) {
    %c0_i32 = arith.constant 0 : i32
    %c0_i32_0 = arith.constant 0 : i32
    %c0_i32_1 = arith.constant 0 : i32
    return %c0_i32, %c0_i32_0 : i32, i32
  }
  func.func @transform_8(%arg0: i32) -> (i32, i32) {
    %c0_i32 = arith.constant 0 : i32
    %c0_i32_0 = arith.constant 0 : i32
    %c0_i32_1 = arith.constant 0 : i32
    return %c0_i32, %c0_i32_0 : i32, i32
  }
  func.func @transform_9(%arg0: i32) -> (i32, i32) {
    %c0_i32 = arith.constant 0 : i32
    %c0_i32_0 = arith.constant 0 : i32
    %c0_i32_1 = arith.constant 0 : i32
    return %c0_i32, %c0_i32_0 : i32, i32
  }
  func.func @transform_10(%arg0: i32) -> (i32, i32) {
    %c0_i32 = arith.constant 0 : i32
    %c0_i32_0 = arith.constant 0 : i32
    %c0_i32_1 = arith.constant 0 : i32
    return %c0_i32, %c0_i32_0 : i32, i32
  }
  func.func @transform_11(%arg0: i32) -> (i32, i32) {
    %c0_i32 = arith.constant 0 : i32
    %c0_i32_0 = arith.constant 0 : i32
    %c0_i32_1 = arith.constant 0 : i32
    return %c0_i32, %c0_i32_0 : i32, i32
  }
  func.func @transform_12(%arg0: i32) -> (i32, i32) {
    %c0_i32 = arith.constant 0 : i32
    %c0_i32_0 = arith.constant 0 : i32
    return %arg0, %c0_i32 : i32, i32
  }
}

</mosaic_0001>

<bundles_post_ra>
// kernel: ae_forward.1
= control target key start
LH: loop header
LB: loop body
LE: loop exit
PB: predicated region body
PF: predicated region fallthrough
CT: control target
= control target key end

     0   :  { %s1612_s21 = smov 0   ;;  %s1746_s0 = inlined_call_operand.vmem [shape: f32[128,16], index: 0, kind: input, shape index: {}]   ;;  %s1747_s1 = inlined_call_operand.vmem [shape: f32[128,4], index: 1, kind: input, shape index: {}]   ;;  %s1748_s2 = inlined_call_operand.vmem [shape: f32[16,32], index: 2, kind: input, shape index: {}]   ;;  %s1749_s3 = inlined_call_operand.vmem [shape: f32[1,32], index: 3, kind: input, shape index: {}]   ;;  %s1750_s4 = inlined_call_operand.vmem [shape: f32[32,4], index: 4, kind: input, shape index: {}]   ;;  %s1751_s5 = inlined_call_operand.vmem [shape: f32[1,4], index: 5, kind: input, shape index: {}]   ;;  %s1752_s6 = inlined_call_operand.vmem [shape: f32[32,4], index: 6, kind: input, shape index: {}]   ;;  %s1753_s7 = inlined_call_operand.vmem [shape: f32[1,4], index: 7, kind: input, shape index: {}]   ;;  %s1754_s8 = inlined_call_operand.vmem [shape: f32[4,4], index: 8, kind: input, shape index: {}]   ;;  %s1755_s9 = inlined_call_operand.vmem [shape: f32[1,4], index: 9, kind: input, shape index: {}]   ;;  %s1756_s10 = inlined_call_operand.vmem [shape: f32[4,16], index: 10, kind: input, shape index: {}]   ;;  %s1757_s11 = inlined_call_operand.vmem [shape: f32[1,16], index: 11, kind: input, shape index: {}]   ;;  %s1758_s12 = inlined_call_operand.vmem [shape: f32[128,16], index: 12, kind: output, shape index: {}]  }
   0x1 LB: > { %s1265_s22 = sadd.s32 4294967295, %s1545_s21   ;;  %p1269_p0 = scmp.ge.s32.totalorder %s1545_s21, 1  ;;  %s1545_s21 = sphi %s1612_s21, %s22_s21  }
   0x2   : > { %p374_p1 = scmp.lt.s32.totalorder %s1545_s21, 3 }
   0x4   : > { %p375_p2 = pnand %p1269_p0, %p374_p1 }
   0x5   : > { %v447_v0 = vld [vmem:[%s1748_s2] sm:$0xff] (!%p375_p2)  ;;  %v448_v1 = vld [vmem:[%s1748_s2 + $0x8] sm:$0xff] (!%p375_p2)  ;;  %s1270_s27 = sshll.u32 (!%p375_p2), %s1265_s22, 3  ;;  %vm456_vm0 = vcmask (!%p375_p2), 130048   ;;  %v737_v17 = vld [vmem:[%s1752_s6 + $0x10] sm:$0xff] (!%p375_p2)  ;;  %vm605_vm1 = vcmask (!%p375_p2), 261120  }
   0x6   : > { %378 = sbr.rel (%p375_p2) target bundleno = 935 (0x3a7), region = 68  ;;  %v1461_v2 = vpack.c.bf16 (!%p375_p2), %v448_v1, %v447_v0  ;;  %p422_p3 = scmp.lt.s32.totalorder (!%p375_p2), %s1270_s27, 15  ;;  %v735_v11 = vld [vmem:[%s1752_s6] sm:$0xff] (!%p375_p2)  ;;  %v736_v12 = vld [vmem:[%s1752_s6 + $0x8] sm:$0xff] (!%p375_p2)  ;;  %v738_v18 = vld [vmem:[%s1752_s6 + $0x18] sm:$0xff] (!%p375_p2)  ;;  %vm932_vm2 = vcmask (!%p375_p2), 1043456  }
   0x7   : > { %v594_v13 = vld [vmem:[%s1750_s4] sm:$0xff] (!%p375_p2)  ;;  %v1473_v14 = vpack.c.bf16 (!%p375_p2), %v736_v12, %v735_v11  ;;  %v595_v15 = vld [vmem:[%s1750_s4 + $0x8] sm:$0xff] (!%p375_p2)  ;;  %v596_v19 = vld [vmem:[%s1750_s4 + $0x10] sm:$0xff] (!%p375_p2)  ;;  %v1477_v20 = vpack.c.bf16 (!%p375_p2), %v738_v18, %v737_v17  ;;  %vm907_vm3 = vcmask (!%p375_p2), 31744  }
   0x8   : > { %1462 = vmatprep.subr.bf16.mxu0 (!%p375_p2), %v1461_v2  ;;  %1481 = vmatprep.subr.bf16.mxu1 (!%p375_p2), %v1461_v2  ;;  %v1465_v16 = vpack.c.bf16 (!%p375_p2), %v595_v15, %v594_v13  ;;  %v597_v21 = vld [vmem:[%s1750_s4 + $0x18] sm:$0xff] (!%p375_p2)  ;;  %v1276_v23 = vld [vmem:[%s1749_s3] ss:$0 sm:$0xff] (!%p375_p2) }
   0x9   : > { %1464 = vmatpush3.bf16.msra.mxu0 (!%p375_p2), %v1461_v2  ;;  %1482 = vmatpush3.bf16.msra.mxu1 (!%p375_p2), %v1461_v2  ;;  %v1469_v22 = vpack.c.bf16 (!%p375_p2), %v597_v21, %v596_v19  ;;  %v899_v48 = vld [vmem:[%s1754_s8] sm:$0xf] (!%p375_p2) }
   0xa   : > { %1474 = vmatprep.subr.bf16.mxu0 (!%p375_p2), %v1473_v14  ;;  %1466 = vmatprep.subr.bf16.mxu1 (!%p375_p2), %v1465_v16  ;;  %v1049_v49 = vld [vmem:[%s1756_s10] sm:$0xf] (!%p375_p2) }
   0xb   : > { %v1294_v50 = vld [vmem:[%s1753_s7] ss:$0 sm:$0xff] (!%p375_p2) }
   0xd   : > { %s1760_s27 = smov (!%p422_p3, %s1270_s27), 15 }
   0xe   : > { %s1626_s28 = sshll.u32 %s1760_s27, 3 }
   0xf   : > { %s425_s13 = scalar_lea.vmem %s1746_s0, %s1626_s28  ;;  %s1696_s25 = scalar_lea.vmem %s1747_s1, %s1626_s28 }
  0x10   : > { %v439_v3 = vld [vmem:[%s425_s13] sm:$0xff]  ;;  %v440_v4 = vld [vmem:[%s425_s13 + $0x8] sm:$0xff]  ;;  %v441_v5 = vld [vmem:[%s425_s13 + $0x10] sm:$0xff]  ;;  %s437_s17 = scalar_lea.vmem %s1758_s12, %s1626_s28 }
  0x11   : > { %1381 = vmatprep.mubr.msk.f32.mxu0 %vm456_vm0, %v439_v3  ;;  %v443_v6 = vld [vmem:[%s425_s13 + $0x20] sm:$0xff]  ;;  %v444_v7 = vld [vmem:[%s425_s13 + $0x28] sm:$0xff]  ;;  %v445_v8 = vld [vmem:[%s425_s13 + $0x30] sm:$0xff] }
  0x12   : > { %1382 = vmatmul.mubr.msk.f32.vlgmr.msra.gmra.mrb[0].mxu0 %vm456_vm0, %v440_v4  ;;  %1387 = vmatprep.mubr.msk.f32.mxu1 %vm456_vm0, %v443_v6  ;;  %v442_v9 = vld [vmem:[%s425_s13 + $0x18] sm:$0xff] }
  0x13   : > { %1384 = vmatprep.mubr.msk.f32.mxu0 %vm456_vm0, %v441_v5  ;;  %1388 = vmatmul.mubr.msk.f32.vlgmr.msra.gmra.mrb[0].mxu1 %vm456_vm0, %v444_v7  ;;  %v446_v10 = vld [vmem:[%s425_s13 + $0x38] sm:$0xff] }
  0x14   : > { %1390 = vmatprep.mubr.msk.f32.mxu1 %vm456_vm0, %v445_v8  ;;  %1476 = vmatpush3.bf16.msra.mxu0 %v1473_v14 }
  0x15   : > { %1468 = vmatpush3.bf16.msra.mxu1 %v1465_v16  ;;  %1478 = vmatprep.subr.bf16.mxu0 %v1477_v20 }
  0x16   : > { %1385 = vmatmul.mubr.msk.f32.gmra.mrb[2].mxu0 %vm456_vm0, %v442_v9  ;;  %1470 = vmatprep.subr.bf16.mxu1 %v1469_v22 }
  0x17   : > { %1391 = vmatmul.mubr.msk.f32.gmra.mrb[2].mxu1 %vm456_vm0, %v446_v10 }
  0x18   : > { %1480 = vmatpush3.bf16.msra.mxu0 %v1477_v20 }
  0x19   : > { %1472 = vmatpush3.bf16.msra.mxu1 %v1469_v22  ;;  %1447 = vmatprep.subr.msk.mxu0 %vm932_vm2, %v1049_v49 }
  0x1a   : > { %1433 = vmatprep.subr.msk.mxu1 %vm932_vm2, %v899_v48 }
  0xe5   : > { %v1383_v24 = vpop.f32.mrb[0].mxu0 }
  0xe6   : > { %v553_v25 = vadd.f32 %v1383_v24, %v1276_v23  ;;  %v547_v26 = vpop.f32.mrb[1].mxu0  ;;  %v1389_v27 = vpop.f32.mrb[0].mxu1  ;;  %v852_v24 = vld [vmem:[%s1696_s25 + $0x8] sm:$0xff] }
  0xe7   : > { %v548_v28 = vadd.f32 %v1276_v23, %v547_v26  ;;  %v567_v29 = vpop.f32.mrb[1].mxu1  ;;  %v573_v38 = vadd.f32 %v1389_v27, %v1276_v23  ;;  %v851_v27 = vld [vmem:[%s1696_s25] sm:$0xff] }
  0xe8   : > { %v568_v30 = vadd.f32 %v1276_v23, %v567_v29 }
  0xe9   : > { %1491 = vtanh.f32 %v548_v28  ;;  %v1386_v31 = vpop.f32.mrb[2].mxu0 }
  0xea   : > { %1493 = vtanh.f32 %v553_v25  ;;  %v563_v32 = vadd.f32 %v1386_v31, %v1276_v23  ;;  %v557_v33 = vpop.f32.mrb[3].mxu0  ;;  %v1392_v34 = vpop.f32.mrb[2].mxu1 }
  0xeb   : > { %v558_v35 = vadd.f32 %v1276_v23, %v557_v33  ;;  %v577_v36 = vpop.f32.mrb[3].mxu1  ;;  %1495 = vtanh.f32 %v568_v30  ;;  %v583_v39 = vadd.f32 %v1392_v34, %v1276_v23 }
  0xec   : > { %v578_v37 = vadd.f32 %v1276_v23, %v577_v36  ;;  %v1285_v23 = vld [vmem:[%s1751_s5] ss:$0 sm:$0xff]  ;;  %v854_v36 = vld [vmem:[%s1696_s25 + $0x18] sm:$0xff] }
  0xed   : > { %1497 = vtanh.f32 %v558_v35 }
  0xee   : > { %1499 = vtanh.f32 %v563_v32 }
  0xef   : > { %1501 = vtanh.f32 %v578_v37 }
  0xf0   : > { %1503 = vtanh.f32 %v573_v38  ;;  %v853_v38 = vld [vmem:[%s1696_s25 + $0x10] sm:$0xff] }
  0xf1   : > { %1505 = vtanh.f32 %v583_v39 }
  0xf3   : > { %v1492_v40 = vpop.eup %1491 }
  0xf4   : > { %v1494_v41 = vpop.eup %1493  ;;  %1401 = vmatprep.mubr.msk.f32.mxu1 %vm605_vm1, %v1492_v40  ;;  %1421 = vmatprep.mubr.msk.f32.mxu0 %vm605_vm1, %v1492_v40 }
  0xf5   : > { %1402 = vmatmul.mubr.msk.f32.vlgmr.msra.gmra.mrb[4].mxu1 %vm605_vm1, %v1494_v41  ;;  %1422 = vmatmul.mubr.msk.f32.vlgmr.msra.gmra.mrb[4].mxu0 %vm605_vm1, %v1494_v41  ;;  %v1496_v42 = vpop.eup %1495 }
  0xf6   : > { %1434 = vmatpush3.msk.msra.mxu1 %vm932_vm2, %v899_v48  ;;  %1448 = vmatpush3.msk.msra.mxu0 %vm932_vm2, %v1049_v49  ;;  %v855_v48 = vld [vmem:[%s1696_s25 + $0x20] sm:$0xff] }
  0xf7   : > { %v1498_v43 = vpop.eup %1497 }
  0xf8   : > { %v1500_v44 = vpop.eup %1499  ;;  %1404 = vmatprep.mubr.msk.f32.mxu1 %vm605_vm1, %v1498_v43  ;;  %1424 = vmatprep.mubr.msk.f32.mxu0 %vm605_vm1, %v1498_v43 }
  0xf9   : > { %1405 = vmatmul.mubr.msk.f32.gmra.mrb[6].mxu1 %vm605_vm1, %v1500_v44  ;;  %1425 = vmatmul.mubr.msk.f32.gmra.mrb[6].mxu0 %vm605_vm1, %v1500_v44  ;;  %v1502_v45 = vpop.eup %1501 }
  0xfa   : > { %1407 = vmatprep.mubr.msk.f32.mxu1 %vm605_vm1, %v1496_v42  ;;  %1427 = vmatprep.mubr.msk.f32.mxu0 %vm605_vm1, %v1496_v42  ;;  %v1504_v46 = vpop.eup %1503 }
  0xfb   : > { %v1506_v47 = vpop.eup %1505 }
  0xfd   : > { %1408 = vmatmul.mubr.msk.f32.gmra.mrb[8].mxu1 %vm605_vm1, %v1504_v46  ;;  %1428 = vmatmul.mubr.msk.f32.gmra.mrb[8].mxu0 %vm605_vm1, %v1504_v46  ;;  %v856_v46 = vld [vmem:[%s1696_s25 + $0x28] sm:$0xff] }
  0xfe   : > { %1410 = vmatprep.mubr.msk.f32.mxu1 %vm605_vm1, %v1502_v45  ;;  %1430 = vmatprep.mubr.msk.f32.mxu0 %vm605_vm1, %v1502_v45 }
 0x101   : > { %1411 = vmatmul.mubr.msk.f32.gmra.mrb[10].mxu1 %vm605_vm1, %v1506_v47  ;;  %1431 = vmatmul.mubr.msk.f32.gmra.mrb[10].mxu0 %vm605_vm1, %v1506_v47 }
 0x1c8   : > { %v1403_v51 = vpop.f32.mrb[4].mxu1  ;;  %v1423_v52 = vpop.f32.mrb[4].mxu0 }
 0x1c9   : > { %v818_v53 = vadd.f32 %v1423_v52, %v1294_v50  ;;  %v696_v54 = vpop.f32.mrb[5].mxu1  ;;  %v812_v55 = vpop.f32.mrb[5].mxu0  ;;  %v702_v31 = vadd.f32 %v1403_v51, %v1285_v23 }
 0x1ca   : > { %v813_v56 = vadd.f32 %v1294_v50, %v812_v55  ;;  %v697_v34 = vadd.f32 %v1285_v23, %v696_v54 }
 0x1cb   : > { %v860_v57 = vmul.f32 0.5, %v818_v53 }
 0x1cc   : > { %v859_v58 = vmul.f32 0.5, %v813_v56  ;;  %v1406_v59 = vpop.f32.mrb[6].mxu1  ;;  %v1426_v60 = vpop.f32.mrb[6].mxu0  ;;  %v858_v56 = vld [vmem:[%s1696_s25 + $0x38] sm:$0xff] }
 0x1cd   : > { %v869_v61 = vmul.f32 1.442695, %v860_v57  ;;  %v828_v62 = vadd.f32 %v1426_v60, %v1294_v50  ;;  %v706_v63 = vpop.f32.mrb[7].mxu1  ;;  %v822_v0 = vpop.f32.mrb[7].mxu0  ;;  %v712_v42 = vadd.f32 %v1406_v59, %v1285_v23 }
 0x1ce   : > { %v867_v1 = vmul.f32 1.442695, %v859_v58  ;;  %v823_v2 = vadd.f32 %v1294_v50, %v822_v0  ;;  %v707_v44 = vadd.f32 %v1285_v23, %v706_v63  ;;  %v857_v58 = vld [vmem:[%s1696_s25 + $0x30] sm:$0xff] }
 0x1cf   : > { %1507 = vpow2.f32 %v869_v61  ;;  %v862_v3 = vmul.f32 0.5, %v828_v62 }
 0x1d0   : > { %1509 = vpow2.f32 %v867_v1  ;;  %v861_v4 = vmul.f32 0.5, %v823_v2  ;;  %v1409_v5 = vpop.f32.mrb[8].mxu1  ;;  %v1429_v6 = vpop.f32.mrb[8].mxu0 }
 0x1d1   : > { %v873_v7 = vmul.f32 1.442695, %v862_v3  ;;  %v838_v8 = vadd.f32 %v1429_v6, %v1294_v50  ;;  %v716_v9 = vpop.f32.mrb[9].mxu1  ;;  %v832_v10 = vpop.f32.mrb[9].mxu0  ;;  %v722_v52 = vadd.f32 %v1409_v5, %v1285_v23 }
 0x1d2   : > { %v871_v11 = vmul.f32 1.442695, %v861_v4  ;;  %v833_v12 = vadd.f32 %v1294_v50, %v832_v10  ;;  %v717_v54 = vadd.f32 %v1285_v23, %v716_v9  ;;  %v1303_v4 = vld [vmem:[%s1755_s9] ss:$0 sm:$0xff] }
 0x1d3   : > { %1511 = vpow2.f32 %v873_v7  ;;  %v864_v13 = vmul.f32 0.5, %v838_v8 }
 0x1d4   : > { %1513 = vpow2.f32 %v871_v11  ;;  %v863_v14 = vmul.f32 0.5, %v833_v12  ;;  %v1412_v15 = vpop.f32.mrb[10].mxu1  ;;  %v1432_v16 = vpop.f32.mrb[10].mxu0 }
 0x1d5   : > { %v877_v17 = vmul.f32 1.442695, %v864_v13  ;;  %v848_v18 = vadd.f32 %v1432_v16, %v1294_v50  ;;  %v726_v19 = vpop.f32.mrb[11].mxu1  ;;  %v842_v20 = vpop.f32.mrb[11].mxu0  ;;  %v732_v62 = vadd.f32 %v1412_v15, %v1285_v23 }
 0x1d6   : > { %v875_v21 = vmul.f32 1.442695, %v863_v14  ;;  %v843_v22 = vadd.f32 %v1294_v50, %v842_v20  ;;  %v727_v0 = vadd.f32 %v1285_v23, %v726_v19 }
 0x1d7   : > { %1515 = vpow2.f32 %v877_v17  ;;  %v866_v25 = vmul.f32 0.5, %v848_v18 }
 0x1d8   : > { %1517 = vpow2.f32 %v875_v21  ;;  %v865_v26 = vmul.f32 0.5, %v843_v22 }
 0x1d9   : > { %v1508_v28 = vpop.eup %1507  ;;  %v881_v29 = vmul.f32 1.442695, %v866_v25 }
 0x1da   : > { %v1510_v30 = vpop.eup %1509  ;;  %v884_v32 = vmul.f32 %v1508_v28, %v852_v24  ;;  %v879_v33 = vmul.f32 1.442695, %v865_v26 }
 0x1db   : > { %1519 = vpow2.f32 %v881_v29  ;;  %v883_v35 = vmul.f32 %v1510_v30, %v851_v27  ;;  %v1313_v29 = vld [vmem:[%s1757_s11] ss:$0 sm:$0xff] }
 0x1dc   : > { %v892_v37 = vadd.f32 %v884_v32, %v702_v31  ;;  %1521 = vpow2.f32 %v879_v33 }
 0x1dd   : > { %v1512_v39 = vpop.eup %1511  ;;  %v891_v40 = vadd.f32 %v883_v35, %v697_v34 }
 0x1de   : > { %v1514_v41 = vpop.eup %1513  ;;  %v886_v43 = vmul.f32 %v1512_v39, %v854_v36 }
 0x1df   : > { %1435 = vmatprep.mubr.msk.f32.mxu1 %vm907_vm3, %v891_v40  ;;  %v885_v45 = vmul.f32 %v1514_v41, %v853_v38 }
 0x1e0   : > { %1436 = vmatmul.mubr.msk.f32.vlgmr.msra.gmra.mrb[12].mxu1 %vm907_vm3, %v892_v37  ;;  %v894_v47 = vadd.f32 %v886_v43, %v712_v42 }
 0x1e1   : > { %v1516_v49 = vpop.eup %1515  ;;  %v893_v50 = vadd.f32 %v885_v45, %v707_v44 }
 0x1e2   : > { %v1518_v51 = vpop.eup %1517  ;;  %v888_v53 = vmul.f32 %v1516_v49, %v856_v46 }
 0x1e3   : > { %1438 = vmatprep.mubr.msk.f32.mxu1 %vm907_vm3, %v893_v50  ;;  %v887_v55 = vmul.f32 %v1518_v51, %v855_v48 }
 0x1e4   : > { %1439 = vmatmul.mubr.msk.f32.gmra.mrb[14].mxu1 %vm907_vm3, %v894_v47  ;;  %v896_v57 = vadd.f32 %v888_v53, %v722_v52 }
 0x1e5   : > { %v1520_v59 = vpop.eup %1519  ;;  %v895_v60 = vadd.f32 %v887_v55, %v717_v54 }
 0x1e6   : > { %v1522_v61 = vpop.eup %1521  ;;  %v890_v63 = vmul.f32 %v1520_v59, %v858_v56 }
 0x1e7   : > { %1441 = vmatprep.mubr.msk.f32.mxu1 %vm907_vm3, %v895_v60  ;;  %v889_v1 = vmul.f32 %v1522_v61, %v857_v58 }
 0x1e8   : > { %1442 = vmatmul.mubr.msk.f32.gmra.mrb[16].mxu1 %vm907_vm3, %v896_v57  ;;  %v898_v2 = vadd.f32 %v890_v63, %v732_v62 }
 0x1e9   : > { %v897_v3 = vadd.f32 %v889_v1, %v727_v0 }
 0x1eb   : > { %1444 = vmatprep.mubr.msk.f32.mxu1 %vm907_vm3, %v897_v3 }
 0x1ec   : > { %1445 = vmatmul.mubr.msk.f32.gmra.mrb[18].mxu1 %vm907_vm3, %v898_v2 }
 0x2b3   : > { %v1437_v5 = vpop.f32.mrb[12].mxu1 }
 0x2b4   : > { %v1008_v6 = vadd.f32 %v1437_v5, %v1303_v4  ;;  %v1002_v7 = vpop.f32.mrb[13].mxu1 }
 0x2b5   : > { %v1003_v8 = vadd.f32 %v1303_v4, %v1002_v7 }
 0x2b7   : > { %1523 = vtanh.f32 %v1003_v8  ;;  %v1440_v9 = vpop.f32.mrb[14].mxu1 }
 0x2b8   : > { %1525 = vtanh.f32 %v1008_v6  ;;  %v1018_v10 = vadd.f32 %v1440_v9, %v1303_v4  ;;  %v1012_v11 = vpop.f32.mrb[15].mxu1 }
 0x2b9   : > { %v1013_v12 = vadd.f32 %v1303_v4, %v1012_v11 }
 0x2bb   : > { %1527 = vtanh.f32 %v1013_v12  ;;  %v1443_v13 = vpop.f32.mrb[16].mxu1 }
 0x2bc   : > { %1529 = vtanh.f32 %v1018_v10  ;;  %v1028_v14 = vadd.f32 %v1443_v13, %v1303_v4  ;;  %v1022_v15 = vpop.f32.mrb[17].mxu1 }
 0x2bd   : > { %v1023_v16 = vadd.f32 %v1303_v4, %v1022_v15 }
 0x2bf   : > { %1531 = vtanh.f32 %v1023_v16  ;;  %v1446_v17 = vpop.f32.mrb[18].mxu1 }
 0x2c0   : > { %1533 = vtanh.f32 %v1028_v14  ;;  %v1038_v18 = vadd.f32 %v1446_v17, %v1303_v4  ;;  %v1032_v19 = vpop.f32.mrb[19].mxu1 }
 0x2c1   : > { %v1524_v20 = vpop.eup %1523  ;;  %v1033_v21 = vadd.f32 %v1303_v4, %v1032_v19 }
 0x2c2   : > { %v1526_v22 = vpop.eup %1525  ;;  %1449 = vmatprep.mubr.msk.f32.mxu0 %vm907_vm3, %v1524_v20 }
 0x2c3   : > { %1535 = vtanh.f32 %v1033_v21  ;;  %1450 = vmatmul.mubr.msk.f32.vlgmr.msra.gmra.mrb[12].mxu0 %vm907_vm3, %v1526_v22 }
 0x2c4   : > { %1537 = vtanh.f32 %v1038_v18 }
 0x2c5   : > { %v1528_v23 = vpop.eup %1527 }
 0x2c6   : > { %v1530_v24 = vpop.eup %1529  ;;  %1452 = vmatprep.mubr.msk.f32.mxu0 %vm907_vm3, %v1528_v23 }
 0x2c7   : > { %1453 = vmatmul.mubr.msk.f32.gmra.mrb[14].mxu0 %vm907_vm3, %v1530_v24 }
 0x2c9   : > { %v1532_v25 = vpop.eup %1531 }
 0x2ca   : > { %v1534_v26 = vpop.eup %1533  ;;  %1455 = vmatprep.mubr.msk.f32.mxu0 %vm907_vm3, %v1532_v25 }
 0x2cb   : > { %1456 = vmatmul.mubr.msk.f32.gmra.mrb[16].mxu0 %vm907_vm3, %v1534_v26 }
 0x2cd   : > { %v1536_v27 = vpop.eup %1535 }
 0x2ce   : > { %v1538_v28 = vpop.eup %1537  ;;  %1458 = vmatprep.mubr.msk.f32.mxu0 %vm907_vm3, %v1536_v27 }
 0x2cf   : > { %1459 = vmatmul.mubr.msk.f32.gmra.mrb[18].mxu0 %vm907_vm3, %v1538_v28 }
 0x396   : > { %v1451_v30 = vpop.f32.mrb[12].mxu0 }
 0x397   : > { %v1156_v31 = vadd.f32 %v1451_v30, %v1313_v29  ;;  %v1150_v32 = vpop.f32.mrb[13].mxu0 }
 0x398   : > { %v1151_v33 = vadd.f32 %v1313_v29, %v1150_v32 }
 0x399   : > { %1190 = vst.msk [vmem:[%s437_s17 + $0x8] sm:$0xff] %vm456_vm0, %v1156_v31 }
 0x39a   : > { %1189 = vst.msk [vmem:[%s437_s17] sm:$0xff] %vm456_vm0, %v1151_v33  ;;  %v1454_v34 = vpop.f32.mrb[14].mxu0 }
 0x39b   : > { %v1166_v35 = vadd.f32 %v1454_v34, %v1313_v29  ;;  %v1160_v36 = vpop.f32.mrb[15].mxu0 }
 0x39c   : > { %v1161_v37 = vadd.f32 %v1313_v29, %v1160_v36 }
 0x39d   : > { %1192 = vst.msk [vmem:[%s437_s17 + $0x18] sm:$0xff] %vm456_vm0, %v1166_v35 }
 0x39e   : > { %1191 = vst.msk [vmem:[%s437_s17 + $0x10] sm:$0xff] %vm456_vm0, %v1161_v37  ;;  %v1457_v38 = vpop.f32.mrb[16].mxu0 }
 0x39f   : > { %v1176_v39 = vadd.f32 %v1457_v38, %v1313_v29  ;;  %v1170_v40 = vpop.f32.mrb[17].mxu0 }
 0x3a0   : > { %v1171_v41 = vadd.f32 %v1313_v29, %v1170_v40 }
 0x3a1   : > { %1194 = vst.msk [vmem:[%s437_s17 + $0x28] sm:$0xff] %vm456_vm0, %v1176_v39 }
 0x3a2   : > { %1193 = vst.msk [vmem:[%s437_s17 + $0x20] sm:$0xff] %vm456_vm0, %v1171_v41  ;;  %v1460_v42 = vpop.f32.mrb[18].mxu0 }
 0x3a3   : > { %v1186_v43 = vadd.f32 %v1460_v42, %v1313_v29  ;;  %v1180_v44 = vpop.f32.mrb[19].mxu0 }
 0x3a4   : > { %v1181_v45 = vadd.f32 %v1313_v29, %v1180_v44 }
 0x3a5   : > { %1196 = vst.msk [vmem:[%s437_s17 + $0x38] sm:$0xff] %vm456_vm0, %v1186_v43 }
 0x3a6   : > { %1195 = vst.msk [vmem:[%s437_s17 + $0x30] sm:$0xff] %vm456_vm0, %v1181_v45 }
 0x3a7 PF: > { %s22_s21 = sadd.s32 1, %s1545_s21  }
 0x3a8   : > { %p19_p4 = scmp.ge.s32.totalorder %s22_s21, 4  }
 0x3aa   :  { %21 = sbr.rel (!%p19_p4) target bundleno = 1 (0x1), region = 101 }

</bundles_post_ra>
